<compile_context>
chip_gen: v7x
topology: tpu7x:2x2x1
jax: 0.10.0
libtpu: 0.0.40
codegen_flags: <defaults>
</compile_context>

<pallas_src>
import math
import functools

import jax
import jax.numpy as jnp
from jax import lax
from jax.experimental import pallas as pl
from jax.experimental.pallas import tpu as pltpu


# Contract the feature axis (axis 1 of both operands): A @ B.T, no transpose.
_DN_ROWS = (((1,), (1,)), ((), ()))
# Contract the batch axis (axis 0 of both operands): A.T @ B, no transpose.
_DN_COLS = (((0,), (0,)), ((), ()))


def _contrastive_loss_kernel(zi_ref, zj_ref, ci_ref, cj_ref, inst_ref, clu_ref, *,
                             batch_size, class_num,
                             temperature_ins, temperature_clu, matmul_dtype):
    f32 = jnp.float32
    B = batch_size
    C = class_num
    inv_t_ins = f32(1.0 / temperature_ins)
    inv_t_clu = f32(1.0 / temperature_clu)

    # ----------------------- instance (SupCon-style) term -------------------
    zi = zi_ref[...].astype(f32)
    zj = zj_ref[...].astype(f32)

    # Temperature folded into the LHS operand once (f32, before any bf16 cast).
    zi_s = zi * inv_t_ins
    zj_s = zj * inv_t_ins
    if matmul_dtype is not None:
        zi_s_mm = zi_s.astype(matmul_dtype)
        zj_s_mm = zj_s.astype(matmul_dtype)
        zi_mm = zi.astype(matmul_dtype)
        zj_mm = zj.astype(matmul_dtype)
    else:
        zi_s_mm, zj_s_mm, zi_mm, zj_mm = zi_s, zj_s, zi, zj

    # Only 3 of the 4 (B,B) Gram blocks: s_ji == s_ij^T is realized below via
    # axis=0 (column) reductions instead of a 4th matmul or a transpose.
    s_ii = lax.dot_general(zi_s_mm, zi_mm, _DN_ROWS, preferred_element_type=f32)
    s_ij = lax.dot_general(zi_s_mm, zj_mm, _DN_ROWS, preferred_element_type=f32)
    s_jj = lax.dot_general(zj_s_mm, zj_mm, _DN_ROWS, preferred_element_type=f32)

    eye_b = (lax.broadcasted_iota(jnp.int32, (B, B), 0)
             == lax.broadcasted_iota(jnp.int32, (B, B), 1))

    # Positive logit = diag(s_ij), extracted from the SAME (possibly bf16) Gram
    # used for the max / exp-sums so rounding stays consistent per anchor.
    pos_col = jnp.sum(jnp.where(eye_b, s_ij, 0.0), axis=1, keepdims=True)   # (B,1)
    pos_row = jnp.sum(jnp.where(eye_b, s_ij, 0.0), axis=0, keepdims=True)   # (1,B)

    # Anchors from z_i: row r of [s_ii | s_ij]; row max includes the diagonal
    # (matching the reference); the exp-sum excludes diag(s_ii).
    m1 = jnp.maximum(jnp.max(s_ii, axis=1, keepdims=True),
                     jnp.max(s_ij, axis=1, keepdims=True))
    l1 = (jnp.sum(jnp.where(eye_b, 0.0, jnp.exp(s_ii - m1)), axis=1, keepdims=True)
          + jnp.sum(jnp.exp(s_ij - m1), axis=1, keepdims=True))
    loss1 = jnp.log(l1) + m1 - pos_col

    # Anchors from z_j: row r of [s_ji | s_jj].  Row r of s_ji == column r of
    # s_ij, and s_jj is symmetric, so everything is an axis=0 reduction of the
    # two existing blocks (runs on the otherwise idle XLU slot).
    m2 = jnp.maximum(jnp.max(s_ij, axis=0, keepdims=True),
                     jnp.max(s_jj, axis=0, keepdims=True))
    l2 = (jnp.sum(jnp.exp(s_ij - m2), axis=0, keepdims=True)
          + jnp.sum(jnp.where(eye_b, 0.0, jnp.exp(s_jj - m2)), axis=0, keepdims=True))
    loss2 = jnp.log(l2) + m2 - pos_row

    inst_ref[0] = (jnp.sum(loss1) + jnp.sum(loss2)) / (2 * B)

    # ------------------- cluster contrastive + entropy term -----------------
    ci = ci_ref[...].astype(f32)
    cj = cj_ref[...].astype(f32)

    # Column Grams via batch-axis contraction (no c.T materialized); k_ji is
    # never built (k_ji == k_ij^T, handled via axis=0 reductions as above).
    k_ii = lax.dot_general(ci, ci, _DN_COLS, preferred_element_type=f32)   # (C,C)
    k_ij = lax.dot_general(ci, cj, _DN_COLS, preferred_element_type=f32)
    k_jj = lax.dot_general(cj, cj, _DN_COLS, preferred_element_type=f32)

    eye_c = (lax.broadcasted_iota(jnp.int32, (C, C), 0)
             == lax.broadcasted_iota(jnp.int32, (C, C), 1))

    # Column L2 norms as (1,C) rows (direct sums) and (C,1) columns (Gram diag,
    # avoids any relayout of a small vector).
    norm_i_row = jnp.sqrt(jnp.sum(ci * ci, axis=0, keepdims=True))
    norm_j_row = jnp.sqrt(jnp.sum(cj * cj, axis=0, keepdims=True))
    norm_i_col = jnp.sqrt(jnp.maximum(
        jnp.sum(jnp.where(eye_c, k_ii, 0.0), axis=1, keepdims=True), 0.0))
    norm_j_col = jnp.sqrt(jnp.maximum(
        jnp.sum(jnp.where(eye_c, k_jj, 0.0), axis=1, keepdims=True), 0.0))

    eps = f32(1e-8)
    # Cosine / temperature; reciprocal on the EUP slot instead of VALU divides.
    s_c_ii = k_ii * (inv_t_clu * pl.reciprocal(jnp.maximum(norm_i_col * norm_i_row, eps)))
    s_c_ij = k_ij * (inv_t_clu * pl.reciprocal(jnp.maximum(norm_i_col * norm_j_row, eps)))
    s_c_jj = k_jj * (inv_t_clu * pl.reciprocal(jnp.maximum(norm_j_col * norm_j_row, eps)))

    # Positive logit for BOTH anchor halves is diag(s_c_ij) (sim is symmetric).
    posc_col = jnp.sum(jnp.where(eye_c, s_c_ij, 0.0), axis=1, keepdims=True)  # (C,1)
    posc_row = jnp.sum(jnp.where(eye_c, s_c_ij, 0.0), axis=0, keepdims=True)  # (1,C)

    # First-half anchors (columns of c_i): rows of [s_c_ii | s_c_ij];
    # the denominator excludes diag(s_c_ii) only (positive stays included).
    m1c = jnp.maximum(jnp.max(s_c_ii, axis=1, keepdims=True),
                      jnp.max(s_c_ij, axis=1, keepdims=True))
    l1c = (jnp.sum(jnp.where(eye_c, 0.0, jnp.exp(s_c_ii - m1c)), axis=1, keepdims=True)
           + jnp.sum(jnp.exp(s_c_ij - m1c), axis=1, keepdims=True))
    lse1 = m1c + jnp.log(l1c)

    # Second-half anchors (columns of c_j): columns of s_c_ij and of s_c_jj
    # (symmetric); the denominator excludes diag(s_c_jj) only.
    m2c = jnp.maximum(jnp.max(s_c_ij, axis=0, keepdims=True),
                      jnp.max(s_c_jj, axis=0, keepdims=True))
    l2c = (jnp.sum(jnp.exp(s_c_ij - m2c), axis=0, keepdims=True)
           + jnp.sum(jnp.where(eye_c, 0.0, jnp.exp(s_c_jj - m2c)), axis=0, keepdims=True))
    lse2 = m2c + jnp.log(l2c)

    cluster_loss = (jnp.sum(lse1 - posc_col) + jnp.sum(lse2 - posc_row)) / (2 * C)

    # Entropy regularizer on column marginals (no transposed layout needed).
    p_i = jnp.sum(ci, axis=0, keepdims=True)
    p_i = p_i / jnp.sum(p_i)
    ne_i = f32(math.log(class_num)) + jnp.sum(p_i * jnp.log(p_i))
    p_j = jnp.sum(cj, axis=0, keepdims=True)
    p_j = p_j / jnp.sum(p_j)
    ne_j = f32(math.log(class_num)) + jnp.sum(p_j * jnp.log(p_j))

    clu_ref[0] = cluster_loss + ne_i + ne_j


def contrastive_loss_forward(z_i, z_j, c_i, c_j, *,
                             temperature_ins, temperature_clu,
                             matmul_dtype=jnp.bfloat16, vmem_limit_bytes=None):
    """Pallas implementation of ContrastiveLoss.forward.

    Returns (instance_loss, cluster_loss + ne_loss) as scalar f32 arrays.
    matmul_dtype controls the MXU input dtype of the instance Grams only
    (f32 accumulation always); default bf16 gives ~2x MXU throughput on every
    TPU generation with ~1e-2 absolute loss tolerance.  Pass matmul_dtype=None
    for a bit-tight f32 path.
    """
    batch_size, feature_dim = z_i.shape
    class_num = c_i.shape[1]

    kernel = functools.partial(
        _contrastive_loss_kernel,
        batch_size=batch_size, class_num=class_num,
        temperature_ins=float(temperature_ins),
        temperature_clu=float(temperature_clu),
        matmul_dtype=matmul_dtype)

    # Advisory cost estimate so XLA schedules/overlaps the custom call sensibly.
    flops = int(2 * 3 * batch_size * batch_size * feature_dim
                + 2 * 3 * batch_size * class_num * class_num)
    transcendentals = int(4 * batch_size * batch_size + 4 * class_num * class_num)
    bytes_accessed = int(sum(int(a.size) * a.dtype.itemsize
                             for a in (z_i, z_j, c_i, c_j)) + 8)
    cost = pl.CostEstimate(flops=flops, transcendentals=transcendentals,
                           bytes_accessed=bytes_accessed)

    compiler_params = None
    if vmem_limit_bytes is not None:
        # Clamp to the running generation's physical VMEM (v7x only has 64 MiB),
        # leaving headroom for double-buffered inputs and internal scratch.
        try:
            cap = int(pltpu.get_tpu_info().vmem_capacity_bytes)
            vmem_limit_bytes = min(int(vmem_limit_bytes), (cap * 7) // 8)
        except Exception:
            vmem_limit_bytes = int(vmem_limit_bytes)
        compiler_params = pltpu.CompilerParams(vmem_limit_bytes=int(vmem_limit_bytes))

    # Native-dtype inputs go straight in; all casting happens inside the kernel.
    inst, clu = pl.pallas_call(
        kernel,
        out_shape=(jax.ShapeDtypeStruct((1,), jnp.float32),
                   jax.ShapeDtypeStruct((1,), jnp.float32)),
        in_specs=[pl.BlockSpec(memory_space=pltpu.MemorySpace.VMEM)
                  for _ in range(4)],
        out_specs=(pl.BlockSpec(memory_space=pltpu.MemorySpace.SMEM),
                   pl.BlockSpec(memory_space=pltpu.MemorySpace.SMEM)),
        compiler_params=compiler_params,
        cost_estimate=cost,
    )(z_i, z_j, c_i, c_j)
    return inst[0], clu[0]


def _reference_forward(z_i, z_j, c_i, c_j, *, temperature_ins, temperature_clu):
    """Pure-JAX reference mirroring the torch code, for validation."""
    batch_size, _ = z_i.shape
    class_num = c_i.shape[1]

    p_i = c_i.sum(0); p_i = p_i / p_i.sum()
    ne_i = math.log(class_num) + (p_i * jnp.log(p_i)).sum()
    p_j = c_j.sum(0); p_j = p_j / p_j.sum()
    ne_j = math.log(class_num) + (p_j * jnp.log(p_j)).sum()
    ne_loss = ne_i + ne_j

    c = jnp.concatenate([c_i.T, c_j.T], axis=0)
    n = 2 * class_num
    norm = jnp.sqrt((c * c).sum(1, keepdims=True))
    sim = (c @ c.T) / jnp.maximum(norm * norm.T, 1e-8) / temperature_clu
    pair = jnp.roll(jnp.eye(n), class_num, axis=1).astype(bool)
    diag = jnp.eye(n, dtype=bool)
    lse = jax.scipy.special.logsumexp(jnp.where(diag, -jnp.inf, sim), axis=1)
    pos = sim[pair].reshape(n)
    cluster_loss = jnp.sum(lse - pos) / n

    f = jnp.concatenate([z_i, z_j], axis=0)
    n2 = 2 * batch_size
    a = (f @ f.T) / temperature_ins
    logits = a - a.max(axis=1, keepdims=True)
    diag2 = jnp.eye(n2, dtype=bool)
    exp_logits = jnp.where(diag2, 0.0, jnp.exp(logits))
    log_prob = logits - jnp.log(exp_logits.sum(1, keepdims=True))
    pair2 = jnp.roll(jnp.eye(n2), batch_size, axis=1).astype(bool)
    mean_log_prob_pos = (jnp.where(pair2, log_prob, 0.0)).sum(1)
    instance_loss = (-mean_log_prob_pos).mean()
    return instance_loss, cluster_loss + ne_loss


if __name__ == "__main__":
    # Hyperparameters of the module (deterministic, in-script).
    batch_size = 8
    class_num = 8
    feature_dim = 32
    temperature_ins = 0.5
    temperature_clu = 1.0

    key = jax.random.PRNGKey(0)
    k1, k2, k3, k4 = jax.random.split(key, 4)
    z_i = jax.random.normal(k1, (batch_size, feature_dim), dtype=jnp.float32)
    z_j = jax.random.normal(k2, (batch_size, feature_dim), dtype=jnp.float32)
    # Instance features are L2-normalized (as produced by TCL's instance head).
    z_i = z_i / jnp.linalg.norm(z_i, axis=1, keepdims=True)
    z_j = z_j / jnp.linalg.norm(z_j, axis=1, keepdims=True)
    # Cluster heads produce softmax probabilities (strictly positive -> log finite).
    c_i = jax.nn.softmax(jax.random.normal(k3, (batch_size, class_num), dtype=jnp.float32), axis=1)
    c_j = jax.nn.softmax(jax.random.normal(k4, (batch_size, class_num), dtype=jnp.float32), axis=1)

    ref_inst, ref_clu_ne = _reference_forward(
        z_i, z_j, c_i, c_j,
        temperature_ins=temperature_ins, temperature_clu=temperature_clu)

    # Exact path (f32 MXU inputs) — tight tolerance.
    inst_f32, clu_f32 = contrastive_loss_forward(
        z_i, z_j, c_i, c_j,
        temperature_ins=temperature_ins, temperature_clu=temperature_clu,
        matmul_dtype=None)
    # Default fast path (bf16 MXU inputs for the instance Grams, f32 accumulation).
    inst_bf16, clu_bf16 = contrastive_loss_forward(
        z_i, z_j, c_i, c_j,
        temperature_ins=temperature_ins, temperature_clu=temperature_clu)
    jax.block_until_ready((inst_f32, clu_f32, inst_bf16, clu_bf16))

    assert jnp.allclose(inst_f32, ref_inst, rtol=1e-4, atol=1e-4), (inst_f32, ref_inst)
    assert jnp.allclose(clu_f32, ref_clu_ne, rtol=1e-4, atol=1e-4), (clu_f32, ref_clu_ne)
    assert jnp.allclose(inst_bf16, ref_inst, rtol=2e-2, atol=2e-2), (inst_bf16, ref_inst)
    assert jnp.allclose(clu_bf16, ref_clu_ne, rtol=1e-4, atol=1e-4), (clu_bf16, ref_clu_ne)

    print("KERNEL_OK")
</pallas_src>

<mosaic_0001>
module attributes {stable_mosaic.version = 11 : i64} {
  func.func @_contrastive_loss_kernel(%arg0: memref<8x32xf32, #tpu.memory_space<vmem>>, %arg1: memref<8x32xf32, #tpu.memory_space<vmem>>, %arg2: memref<8x8xf32, #tpu.memory_space<vmem>>, %arg3: memref<8x8xf32, #tpu.memory_space<vmem>>, %arg4: memref<1xf32, #tpu.memory_space<smem>>, %arg5: memref<1xf32, #tpu.memory_space<smem>>) attributes {dimension_semantics = [], scalar_prefetch = 0 : i64, scratch_operands = 0 : i64, tpu.core_type = #tpu.core_type<tc>} {
    %c0 = arith.constant 0 : index
    %c0_0 = arith.constant 0 : index
    %0 = vector.load %arg0[%c0, %c0_0] : memref<8x32xf32, #tpu.memory_space<vmem>>, vector<8x32xf32>
    %c0_1 = arith.constant 0 : index
    %c0_2 = arith.constant 0 : index
    %1 = vector.load %arg1[%c0_1, %c0_2] : memref<8x32xf32, #tpu.memory_space<vmem>>, vector<8x32xf32>
    %cst = arith.constant 2.000000e+00 : f32
    %2 = vector.broadcast %cst : f32 to vector<8x32xf32>
    %3 = arith.mulf %0, %2 : vector<8x32xf32>
    %cst_3 = arith.constant 2.000000e+00 : f32
    %4 = vector.broadcast %cst_3 : f32 to vector<8x32xf32>
    %5 = arith.mulf %1, %4 : vector<8x32xf32>
    %cst_4 = arith.constant dense<0.000000e+00> : vector<8x8xf32>
    %6 = tpu.matmul %3, %0, %cst_4 {dimension_numbers = #tpu.dot_dimension_numbers<[1], [1], [0], [0], [0, 0, 1, 0], [], []>} : vector<8x32xf32>, vector<8x32xf32>, vector<8x8xf32> -> vector<8x8xf32>
    %cst_5 = arith.constant dense<0.000000e+00> : vector<8x8xf32>
    %7 = tpu.matmul %3, %1, %cst_5 {dimension_numbers = #tpu.dot_dimension_numbers<[1], [1], [0], [0], [0, 0, 1, 0], [], []>} : vector<8x32xf32>, vector<8x32xf32>, vector<8x8xf32> -> vector<8x8xf32>
    %cst_6 = arith.constant dense<0.000000e+00> : vector<8x8xf32>
    %8 = tpu.matmul %5, %1, %cst_6 {dimension_numbers = #tpu.dot_dimension_numbers<[1], [1], [0], [0], [0, 0, 1, 0], [], []>} : vector<8x32xf32>, vector<8x32xf32>, vector<8x8xf32> -> vector<8x8xf32>
    %9 = tpu.iota {dimensions = array<i32: 0>} : vector<8x8xi32>
    %10 = tpu.iota {dimensions = array<i32: 1>} : vector<8x8xi32>
    %11 = arith.cmpi eq, %9, %10 : vector<8x8xi32>
    %cst_7 = arith.constant 0.000000e+00 : f32
    %12 = vector.broadcast %cst_7 : f32 to vector<8x8xf32>
    %13 = arith.select %11, %7, %12 : vector<8x8xi1>, vector<8x8xf32>
    %cst_8 = arith.constant dense<0.000000e+00> : vector<8xf32>
    %14 = vector.multi_reduction <add>, %13, %cst_8 [1] : vector<8x8xf32> to vector<8xf32>
    %15 = vector.shape_cast %14 : vector<8xf32> to vector<8x1xf32>
    %cst_9 = arith.constant 0.000000e+00 : f32
    %16 = vector.broadcast %cst_9 : f32 to vector<8x8xf32>
    %17 = arith.select %11, %7, %16 : vector<8x8xi1>, vector<8x8xf32>
    %cst_10 = arith.constant dense<0.000000e+00> : vector<8xf32>
    %18 = vector.multi_reduction <add>, %17, %cst_10 [0] : vector<8x8xf32> to vector<8xf32>
    %19 = vector.shape_cast %18 : vector<8xf32> to vector<1x8xf32>
    %cst_11 = arith.constant dense<0xFF800000> : vector<8xf32>
    %20 = vector.multi_reduction <maximumf>, %6, %cst_11 [1] : vector<8x8xf32> to vector<8xf32>
    %21 = vector.shape_cast %20 : vector<8xf32> to vector<8x1xf32>
    %cst_12 = arith.constant dense<0xFF800000> : vector<8xf32>
    %22 = vector.multi_reduction <maximumf>, %7, %cst_12 [1] : vector<8x8xf32> to vector<8xf32>
    %23 = vector.shape_cast %22 : vector<8xf32> to vector<8x1xf32>
    %24 = arith.maximumf %21, %23 : vector<8x1xf32>
    %25 = vector.broadcast %24 : vector<8x1xf32> to vector<8x8xf32>
    %26 = arith.subf %6, %25 : vector<8x8xf32>
    %27 = math.exp %26 : vector<8x8xf32>
    %cst_13 = arith.constant 0.000000e+00 : f32
    %28 = vector.broadcast %cst_13 : f32 to vector<8x8xf32>
    %29 = arith.select %11, %28, %27 : vector<8x8xi1>, vector<8x8xf32>
    %cst_14 = arith.constant dense<0.000000e+00> : vector<8xf32>
    %30 = vector.multi_reduction <add>, %29, %cst_14 [1] : vector<8x8xf32> to vector<8xf32>
    %31 = vector.shape_cast %30 : vector<8xf32> to vector<8x1xf32>
    %32 = vector.broadcast %24 : vector<8x1xf32> to vector<8x8xf32>
    %33 = arith.subf %7, %32 : vector<8x8xf32>
    %34 = math.exp %33 : vector<8x8xf32>
    %cst_15 = arith.constant dense<0.000000e+00> : vector<8xf32>
    %35 = vector.multi_reduction <add>, %34, %cst_15 [1] : vector<8x8xf32> to vector<8xf32>
    %36 = vector.shape_cast %35 : vector<8xf32> to vector<8x1xf32>
    %37 = arith.addf %31, %36 : vector<8x1xf32>
    %38 = math.log %37 : vector<8x1xf32>
    %39 = arith.addf %38, %24 : vector<8x1xf32>
    %40 = arith.subf %39, %15 : vector<8x1xf32>
    %cst_16 = arith.constant dense<0xFF800000> : vector<8xf32>
    %41 = vector.multi_reduction <maximumf>, %7, %cst_16 [0] : vector<8x8xf32> to vector<8xf32>
    %42 = vector.shape_cast %41 : vector<8xf32> to vector<1x8xf32>
    %cst_17 = arith.constant dense<0xFF800000> : vector<8xf32>
    %43 = vector.multi_reduction <maximumf>, %8, %cst_17 [0] : vector<8x8xf32> to vector<8xf32>
    %44 = vector.shape_cast %43 : vector<8xf32> to vector<1x8xf32>
    %45 = arith.maximumf %42, %44 : vector<1x8xf32>
    %46 = vector.broadcast %45 : vector<1x8xf32> to vector<8x8xf32>
    %47 = arith.subf %7, %46 : vector<8x8xf32>
    %48 = math.exp %47 : vector<8x8xf32>
    %cst_18 = arith.constant dense<0.000000e+00> : vector<8xf32>
    %49 = vector.multi_reduction <add>, %48, %cst_18 [0] : vector<8x8xf32> to vector<8xf32>
    %50 = vector.shape_cast %49 : vector<8xf32> to vector<1x8xf32>
    %51 = vector.broadcast %45 : vector<1x8xf32> to vector<8x8xf32>
    %52 = arith.subf %8, %51 : vector<8x8xf32>
    %53 = math.exp %52 : vector<8x8xf32>
    %cst_19 = arith.constant 0.000000e+00 : f32
    %54 = vector.broadcast %cst_19 : f32 to vector<8x8xf32>
    %55 = arith.select %11, %54, %53 : vector<8x8xi1>, vector<8x8xf32>
    %cst_20 = arith.constant dense<0.000000e+00> : vector<8xf32>
    %56 = vector.multi_reduction <add>, %55, %cst_20 [0] : vector<8x8xf32> to vector<8xf32>
    %57 = vector.shape_cast %56 : vector<8xf32> to vector<1x8xf32>
    %58 = arith.addf %50, %57 : vector<1x8xf32>
    %59 = math.log %58 : vector<1x8xf32>
    %60 = arith.addf %59, %45 : vector<1x8xf32>
    %61 = arith.subf %60, %19 : vector<1x8xf32>
    %62 = vector.shape_cast %40 : vector<8x1xf32> to vector<1x8x1xf32>
    %cst_21 = arith.constant dense<0.000000e+00> : vector<1xf32>
    %63 = vector.multi_reduction <add>, %62, %cst_21 [1, 2] : vector<1x8x1xf32> to vector<1xf32>
    %64 = vector.shape_cast %63 : vector<1xf32> to vector<1x1x1xf32>
    %65 = vector.extract %64[0, 0, 0] : f32 from vector<1x1x1xf32>
    %66 = vector.shape_cast %61 : vector<1x8xf32> to vector<1x1x8xf32>
    %cst_22 = arith.constant dense<0.000000e+00> : vector<1xf32>
    %67 = vector.multi_reduction <add>, %66, %cst_22 [1, 2] : vector<1x1x8xf32> to vector<1xf32>
    %68 = vector.shape_cast %67 : vector<1xf32> to vector<1x1x1xf32>
    %69 = vector.extract %68[0, 0, 0] : f32 from vector<1x1x1xf32>
    %70 = arith.addf %65, %69 : f32
    %cst_23 = arith.constant 1.600000e+01 : f32
    %71 = arith.divf %70, %cst_23 : f32
    %c0_24 = arith.constant 0 : index
    %72 = memref.load %arg4[%c0_24] : memref<1xf32, #tpu.memory_space<smem>>
    memref.store %71, %arg4[%c0_24] : memref<1xf32, #tpu.memory_space<smem>>
    %c0_25 = arith.constant 0 : index
    %c0_26 = arith.constant 0 : index
    %73 = vector.load %arg2[%c0_25, %c0_26] : memref<8x8xf32, #tpu.memory_space<vmem>>, vector<8x8xf32>
    %c0_27 = arith.constant 0 : index
    %c0_28 = arith.constant 0 : index
    %74 = vector.load %arg3[%c0_27, %c0_28] : memref<8x8xf32, #tpu.memory_space<vmem>>, vector<8x8xf32>
    %cst_29 = arith.constant dense<0.000000e+00> : vector<8x8xf32>
    %75 = tpu.matmul %73, %73, %cst_29 {dimension_numbers = #tpu.dot_dimension_numbers<[0], [0], [1], [1], [0, 1, 1, 1], [], []>} : vector<8x8xf32>, vector<8x8xf32>, vector<8x8xf32> -> vector<8x8xf32>
    %cst_30 = arith.constant dense<0.000000e+00> : vector<8x8xf32>
    %76 = tpu.matmul %73, %74, %cst_30 {dimension_numbers = #tpu.dot_dimension_numbers<[0], [0], [1], [1], [0, 1, 1, 1], [], []>} : vector<8x8xf32>, vector<8x8xf32>, vector<8x8xf32> -> vector<8x8xf32>
    %cst_31 = arith.constant dense<0.000000e+00> : vector<8x8xf32>
    %77 = tpu.matmul %74, %74, %cst_31 {dimension_numbers = #tpu.dot_dimension_numbers<[0], [0], [1], [1], [0, 1, 1, 1], [], []>} : vector<8x8xf32>, vector<8x8xf32>, vector<8x8xf32> -> vector<8x8xf32>
    %78 = tpu.iota {dimensions = array<i32: 0>} : vector<8x8xi32>
    %79 = tpu.iota {dimensions = array<i32: 1>} : vector<8x8xi32>
    %80 = arith.cmpi eq, %78, %79 : vector<8x8xi32>
    %81 = arith.mulf %73, %73 : vector<8x8xf32>
    %cst_32 = arith.constant dense<0.000000e+00> : vector<8xf32>
    %82 = vector.multi_reduction <add>, %81, %cst_32 [0] : vector<8x8xf32> to vector<8xf32>
    %83 = vector.shape_cast %82 : vector<8xf32> to vector<1x8xf32>
    %84 = math.sqrt %83 : vector<1x8xf32>
    %85 = arith.mulf %74, %74 : vector<8x8xf32>
    %cst_33 = arith.constant dense<0.000000e+00> : vector<8xf32>
    %86 = vector.multi_reduction <add>, %85, %cst_33 [0] : vector<8x8xf32> to vector<8xf32>
    %87 = vector.shape_cast %86 : vector<8xf32> to vector<1x8xf32>
    %88 = math.sqrt %87 : vector<1x8xf32>
    %cst_34 = arith.constant 0.000000e+00 : f32
    %89 = vector.broadcast %cst_34 : f32 to vector<8x8xf32>
    %90 = arith.select %80, %75, %89 : vector<8x8xi1>, vector<8x8xf32>
    %cst_35 = arith.constant dense<0.000000e+00> : vector<8xf32>
    %91 = vector.multi_reduction <add>, %90, %cst_35 [1] : vector<8x8xf32> to vector<8xf32>
    %92 = vector.shape_cast %91 : vector<8xf32> to vector<8x1xf32>
    %cst_36 = arith.constant 0.000000e+00 : f32
    %93 = vector.broadcast %cst_36 : f32 to vector<8x1xf32>
    %94 = arith.maximumf %92, %93 : vector<8x1xf32>
    %95 = math.sqrt %94 : vector<8x1xf32>
    %cst_37 = arith.constant 0.000000e+00 : f32
    %96 = vector.broadcast %cst_37 : f32 to vector<8x8xf32>
    %97 = arith.select %80, %77, %96 : vector<8x8xi1>, vector<8x8xf32>
    %cst_38 = arith.constant dense<0.000000e+00> : vector<8xf32>
    %98 = vector.multi_reduction <add>, %97, %cst_38 [1] : vector<8x8xf32> to vector<8xf32>
    %99 = vector.shape_cast %98 : vector<8xf32> to vector<8x1xf32>
    %cst_39 = arith.constant 0.000000e+00 : f32
    %100 = vector.broadcast %cst_39 : f32 to vector<8x1xf32>
    %101 = arith.maximumf %99, %100 : vector<8x1xf32>
    %102 = math.sqrt %101 : vector<8x1xf32>
    %103 = vector.broadcast %95 : vector<8x1xf32> to vector<8x8xf32>
    %104 = vector.broadcast %84 : vector<1x8xf32> to vector<8x8xf32>
    %105 = arith.mulf %103, %104 : vector<8x8xf32>
    %cst_40 = arith.constant 9.99999993E-9 : f32
    %106 = vector.broadcast %cst_40 : f32 to vector<8x8xf32>
    %107 = arith.maximumf %105, %106 : vector<8x8xf32>
    %108 = tpu.reciprocal %107 : vector<8x8xf32> -> vector<8x8xf32>
    %cst_41 = arith.constant 1.000000e+00 : f32
    %109 = vector.broadcast %cst_41 : f32 to vector<8x8xf32>
    %110 = arith.mulf %109, %108 : vector<8x8xf32>
    %111 = arith.mulf %75, %110 : vector<8x8xf32>
    %112 = vector.broadcast %95 : vector<8x1xf32> to vector<8x8xf32>
    %113 = vector.broadcast %88 : vector<1x8xf32> to vector<8x8xf32>
    %114 = arith.mulf %112, %113 : vector<8x8xf32>
    %cst_42 = arith.constant 9.99999993E-9 : f32
    %115 = vector.broadcast %cst_42 : f32 to vector<8x8xf32>
    %116 = arith.maximumf %114, %115 : vector<8x8xf32>
    %117 = tpu.reciprocal %116 : vector<8x8xf32> -> vector<8x8xf32>
    %cst_43 = arith.constant 1.000000e+00 : f32
    %118 = vector.broadcast %cst_43 : f32 to vector<8x8xf32>
    %119 = arith.mulf %118, %117 : vector<8x8xf32>
    %120 = arith.mulf %76, %119 : vector<8x8xf32>
    %121 = vector.broadcast %102 : vector<8x1xf32> to vector<8x8xf32>
    %122 = vector.broadcast %88 : vector<1x8xf32> to vector<8x8xf32>
    %123 = arith.mulf %121, %122 : vector<8x8xf32>
    %cst_44 = arith.constant 9.99999993E-9 : f32
    %124 = vector.broadcast %cst_44 : f32 to vector<8x8xf32>
    %125 = arith.maximumf %123, %124 : vector<8x8xf32>
    %126 = tpu.reciprocal %125 : vector<8x8xf32> -> vector<8x8xf32>
    %cst_45 = arith.constant 1.000000e+00 : f32
    %127 = vector.broadcast %cst_45 : f32 to vector<8x8xf32>
    %128 = arith.mulf %127, %126 : vector<8x8xf32>
    %129 = arith.mulf %77, %128 : vector<8x8xf32>
    %cst_46 = arith.constant 0.000000e+00 : f32
    %130 = vector.broadcast %cst_46 : f32 to vector<8x8xf32>
    %131 = arith.select %80, %120, %130 : vector<8x8xi1>, vector<8x8xf32>
    %cst_47 = arith.constant dense<0.000000e+00> : vector<8xf32>
    %132 = vector.multi_reduction <add>, %131, %cst_47 [1] : vector<8x8xf32> to vector<8xf32>
    %133 = vector.shape_cast %132 : vector<8xf32> to vector<8x1xf32>
    %cst_48 = arith.constant 0.000000e+00 : f32
    %134 = vector.broadcast %cst_48 : f32 to vector<8x8xf32>
    %135 = arith.select %80, %120, %134 : vector<8x8xi1>, vector<8x8xf32>
    %cst_49 = arith.constant dense<0.000000e+00> : vector<8xf32>
    %136 = vector.multi_reduction <add>, %135, %cst_49 [0] : vector<8x8xf32> to vector<8xf32>
    %137 = vector.shape_cast %136 : vector<8xf32> to vector<1x8xf32>
    %cst_50 = arith.constant dense<0xFF800000> : vector<8xf32>
    %138 = vector.multi_reduction <maximumf>, %111, %cst_50 [1] : vector<8x8xf32> to vector<8xf32>
    %139 = vector.shape_cast %138 : vector<8xf32> to vector<8x1xf32>
    %cst_51 = arith.constant dense<0xFF800000> : vector<8xf32>
    %140 = vector.multi_reduction <maximumf>, %120, %cst_51 [1] : vector<8x8xf32> to vector<8xf32>
    %141 = vector.shape_cast %140 : vector<8xf32> to vector<8x1xf32>
    %142 = arith.maximumf %139, %141 : vector<8x1xf32>
    %143 = vector.broadcast %142 : vector<8x1xf32> to vector<8x8xf32>
    %144 = arith.subf %111, %143 : vector<8x8xf32>
    %145 = math.exp %144 : vector<8x8xf32>
    %cst_52 = arith.constant 0.000000e+00 : f32
    %146 = vector.broadcast %cst_52 : f32 to vector<8x8xf32>
    %147 = arith.select %80, %146, %145 : vector<8x8xi1>, vector<8x8xf32>
    %cst_53 = arith.constant dense<0.000000e+00> : vector<8xf32>
    %148 = vector.multi_reduction <add>, %147, %cst_53 [1] : vector<8x8xf32> to vector<8xf32>
    %149 = vector.shape_cast %148 : vector<8xf32> to vector<8x1xf32>
    %150 = vector.broadcast %142 : vector<8x1xf32> to vector<8x8xf32>
    %151 = arith.subf %120, %150 : vector<8x8xf32>
    %152 = math.exp %151 : vector<8x8xf32>
    %cst_54 = arith.constant dense<0.000000e+00> : vector<8xf32>
    %153 = vector.multi_reduction <add>, %152, %cst_54 [1] : vector<8x8xf32> to vector<8xf32>
    %154 = vector.shape_cast %153 : vector<8xf32> to vector<8x1xf32>
    %155 = arith.addf %149, %154 : vector<8x1xf32>
    %156 = math.log %155 : vector<8x1xf32>
    %157 = arith.addf %142, %156 : vector<8x1xf32>
    %cst_55 = arith.constant dense<0xFF800000> : vector<8xf32>
    %158 = vector.multi_reduction <maximumf>, %120, %cst_55 [0] : vector<8x8xf32> to vector<8xf32>
    %159 = vector.shape_cast %158 : vector<8xf32> to vector<1x8xf32>
    %cst_56 = arith.constant dense<0xFF800000> : vector<8xf32>
    %160 = vector.multi_reduction <maximumf>, %129, %cst_56 [0] : vector<8x8xf32> to vector<8xf32>
    %161 = vector.shape_cast %160 : vector<8xf32> to vector<1x8xf32>
    %162 = arith.maximumf %159, %161 : vector<1x8xf32>
    %163 = vector.broadcast %162 : vector<1x8xf32> to vector<8x8xf32>
    %164 = arith.subf %120, %163 : vector<8x8xf32>
    %165 = math.exp %164 : vector<8x8xf32>
    %cst_57 = arith.constant dense<0.000000e+00> : vector<8xf32>
    %166 = vector.multi_reduction <add>, %165, %cst_57 [0] : vector<8x8xf32> to vector<8xf32>
    %167 = vector.shape_cast %166 : vector<8xf32> to vector<1x8xf32>
    %168 = vector.broadcast %162 : vector<1x8xf32> to vector<8x8xf32>
    %169 = arith.subf %129, %168 : vector<8x8xf32>
    %170 = math.exp %169 : vector<8x8xf32>
    %cst_58 = arith.constant 0.000000e+00 : f32
    %171 = vector.broadcast %cst_58 : f32 to vector<8x8xf32>
    %172 = arith.select %80, %171, %170 : vector<8x8xi1>, vector<8x8xf32>
    %cst_59 = arith.constant dense<0.000000e+00> : vector<8xf32>
    %173 = vector.multi_reduction <add>, %172, %cst_59 [0] : vector<8x8xf32> to vector<8xf32>
    %174 = vector.shape_cast %173 : vector<8xf32> to vector<1x8xf32>
    %175 = arith.addf %167, %174 : vector<1x8xf32>
    %176 = math.log %175 : vector<1x8xf32>
    %177 = arith.addf %162, %176 : vector<1x8xf32>
    %178 = arith.subf %157, %133 : vector<8x1xf32>
    %179 = vector.shape_cast %178 : vector<8x1xf32> to vector<1x8x1xf32>
    %cst_60 = arith.constant dense<0.000000e+00> : vector<1xf32>
    %180 = vector.multi_reduction <add>, %179, %cst_60 [1, 2] : vector<1x8x1xf32> to vector<1xf32>
    %181 = vector.shape_cast %180 : vector<1xf32> to vector<1x1x1xf32>
    %182 = vector.extract %181[0, 0, 0] : f32 from vector<1x1x1xf32>
    %183 = arith.subf %177, %137 : vector<1x8xf32>
    %184 = vector.shape_cast %183 : vector<1x8xf32> to vector<1x1x8xf32>
    %cst_61 = arith.constant dense<0.000000e+00> : vector<1xf32>
    %185 = vector.multi_reduction <add>, %184, %cst_61 [1, 2] : vector<1x1x8xf32> to vector<1xf32>
    %186 = vector.shape_cast %185 : vector<1xf32> to vector<1x1x1xf32>
    %187 = vector.extract %186[0, 0, 0] : f32 from vector<1x1x1xf32>
    %188 = arith.addf %182, %187 : f32
    %cst_62 = arith.constant 1.600000e+01 : f32
    %189 = arith.divf %188, %cst_62 : f32
    %cst_63 = arith.constant dense<0.000000e+00> : vector<8xf32>
    %190 = vector.multi_reduction <add>, %73, %cst_63 [0] : vector<8x8xf32> to vector<8xf32>
    %191 = vector.shape_cast %190 : vector<8xf32> to vector<1x8xf32>
    %192 = vector.shape_cast %191 : vector<1x8xf32> to vector<1x1x8xf32>
    %cst_64 = arith.constant dense<0.000000e+00> : vector<1xf32>
    %193 = vector.multi_reduction <add>, %192, %cst_64 [1, 2] : vector<1x1x8xf32> to vector<1xf32>
    %194 = vector.shape_cast %193 : vector<1xf32> to vector<1x1x1xf32>
    %195 = vector.extract %194[0, 0, 0] : f32 from vector<1x1x1xf32>
    %196 = vector.broadcast %195 : f32 to vector<1x8xf32>
    %197 = arith.divf %191, %196 : vector<1x8xf32>
    %198 = math.log %197 : vector<1x8xf32>
    %199 = arith.mulf %197, %198 : vector<1x8xf32>
    %200 = vector.shape_cast %199 : vector<1x8xf32> to vector<1x1x8xf32>
    %cst_65 = arith.constant dense<0.000000e+00> : vector<1xf32>
    %201 = vector.multi_reduction <add>, %200, %cst_65 [1, 2] : vector<1x1x8xf32> to vector<1xf32>
    %202 = vector.shape_cast %201 : vector<1xf32> to vector<1x1x1xf32>
    %203 = vector.extract %202[0, 0, 0] : f32 from vector<1x1x1xf32>
    %cst_66 = arith.constant 2.07944155 : f32
    %204 = arith.addf %cst_66, %203 : f32
    %cst_67 = arith.constant dense<0.000000e+00> : vector<8xf32>
    %205 = vector.multi_reduction <add>, %74, %cst_67 [0] : vector<8x8xf32> to vector<8xf32>
    %206 = vector.shape_cast %205 : vector<8xf32> to vector<1x8xf32>
    %207 = vector.shape_cast %206 : vector<1x8xf32> to vector<1x1x8xf32>
    %cst_68 = arith.constant dense<0.000000e+00> : vector<1xf32>
    %208 = vector.multi_reduction <add>, %207, %cst_68 [1, 2] : vector<1x1x8xf32> to vector<1xf32>
    %209 = vector.shape_cast %208 : vector<1xf32> to vector<1x1x1xf32>
    %210 = vector.extract %209[0, 0, 0] : f32 from vector<1x1x1xf32>
    %211 = vector.broadcast %210 : f32 to vector<1x8xf32>
    %212 = arith.divf %206, %211 : vector<1x8xf32>
    %213 = math.log %212 : vector<1x8xf32>
    %214 = arith.mulf %212, %213 : vector<1x8xf32>
    %215 = vector.shape_cast %214 : vector<1x8xf32> to vector<1x1x8xf32>
    %cst_69 = arith.constant dense<0.000000e+00> : vector<1xf32>
    %216 = vector.multi_reduction <add>, %215, %cst_69 [1, 2] : vector<1x1x8xf32> to vector<1xf32>
    %217 = vector.shape_cast %216 : vector<1xf32> to vector<1x1x1xf32>
    %218 = vector.extract %217[0, 0, 0] : f32 from vector<1x1x1xf32>
    %cst_70 = arith.constant 2.07944155 : f32
    %219 = arith.addf %cst_70, %218 : f32
    %220 = arith.addf %189, %204 : f32
    %221 = arith.addf %220, %219 : f32
    %c0_71 = arith.constant 0 : index
    %222 = memref.load %arg5[%c0_71] : memref<1xf32, #tpu.memory_space<smem>>
    memref.store %221, %arg5[%c0_71] : memref<1xf32, #tpu.memory_space<smem>>
    return
  }
}

</mosaic_0001>

<bundles_post_ra>
// kernel: tpu_custom_call.1
= control target key start
LH: loop header
LB: loop body
LE: loop exit
PB: predicated region body
PF: predicated region fallthrough
CT: control target
= control target key end

     0   :  { %11 = vsyncpa [#allocation3], 0  ;;  %s1391_s0 = inlined_call_operand.hbm [shape: f32[8,32], index: 0, kind: input, shape index: {}]   ;;  %s1392_s1 = inlined_call_operand.hbm [shape: f32[8,32], index: 1, kind: input, shape index: {}]   ;;  %s1393_s2 = inlined_call_operand.hbm [shape: f32[8,8], index: 2, kind: input, shape index: {}]   ;;  %s1394_s3 = inlined_call_operand.vmem [shape: f32[8,8], index: 3, kind: input, shape index: {}]   ;;  %s1395_s4 = inlined_call_operand.hbm [shape: f32[1], index: 4, kind: output, shape index: {0}]   ;;  %s1396_s5 = inlined_call_operand.hbm [shape: f32[1], index: 5, kind: output, shape index: {1}]  }
   0x1   :  { %12 = vsyncpa [#allocation6], 0 }
   0x2   :  { %13 = vsyncpa [#allocation4], 0 }
   0x3   :  { %14 = vsyncpa [#allocation10], 0  ;;  %s1152_s18 = smov [#allocation5]   ;;  %s1153_s20 = smov [#allocation2]  }
   0x4   :  { %s31_s19 = sshll.u32 %s1152_s18, 4  ;;  %s21_s21 = sshll.u32 %s1153_s20, 4  ;;  %s32_s19 = int_to_ptr.vmem [resolvable:$true] %s31_s19  ;;  %s22_s21 = int_to_ptr.vmem [resolvable:$true] %s21_s21 }
   0x5   :  { %s1058_s24 = scalar_lea.hbm %s1392_s1, 128 }
   0x6   :  { %p1059_p0 = scmp.ne.s32.totalorder %s1392_s1, %s1058_s24  ;;  %p1062_p1 = scmp.lt.u32.totalorder %s1058_s24, %s1392_s1 }
   0x8   :  { %p1064_p2 = pnand %p1062_p1, %p1059_p0 }
   0xa   :  { %1067 = shalt.err (!%p1064_p2)
}
   0xb   :  { %s1068_s29 = scalar_lea.vmem %s32_s19, 128  ;;  %p1073_p4 = scmp.lt.s32.totalorder %s32_s19, %s32_s19 }
   0xc   :  { %p1069_p3 = scmp.ne.s32.totalorder %s32_s19, %s1068_s29  ;;  %p1074_p5 = scmp.lt.s32.totalorder %s1068_s29, %s1068_s29 }
   0xe   :  { %p1075_p6 = por %p1074_p5, %p1073_p4 }
  0x10   :  { %p1076_p7 = pnand %p1075_p6, %p1069_p3 }
  0x12   :  { %1079 = shalt.err (!%p1076_p7)
}
  0x13   :  { %34 = dma.hbm_to_vmem [thread:$0]  %s1392_s1, 128, %s32_s19, [#allocation6]  }
  0x14   :  { %s1080_s9 = scalar_lea.hbm %s1391_s0, 128 }
  0x15   :  { %p1081_p8 = scmp.ne.s32.totalorder %s1391_s0, %s1080_s9  ;;  %p1084_p9 = scmp.lt.u32.totalorder %s1080_s9, %s1391_s0 }
  0x17   :  { %p1086_p10 = pnand %p1084_p9, %p1081_p8 }
  0x19   :  { %1089 = shalt.err (!%p1086_p10)
}
  0x1a   :  { %s1090_s14 = scalar_lea.vmem %s22_s21, 128  ;;  %p1095_p12 = scmp.lt.s32.totalorder %s22_s21, %s22_s21 }
  0x1b   :  { %p1091_p11 = scmp.ne.s32.totalorder %s22_s21, %s1090_s14  ;;  %p1096_p13 = scmp.lt.s32.totalorder %s1090_s14, %s1090_s14 }
  0x1d   :  { %p1097_p0 = por %p1096_p13, %p1095_p12 }
  0x1f   :  { %p1098_p1 = pnand %p1097_p0, %p1091_p11 }
  0x21   :  { %1101 = shalt.err (!%p1098_p1)
}
  0x22   :  { %24 = dma.hbm_to_vmem [thread:$0]  %s1391_s0, 128, %s22_s21, [#allocation3]  }
  0x23   :  { %s1154_s16 = smov [#allocation7]   ;;  %s1102_s20 = scalar_lea.hbm %s1393_s2, 128 }
  0x24   :  { %s41_s17 = sshll.u32 %s1154_s16, 4  ;;  %p1103_p2 = scmp.ne.s32.totalorder %s1393_s2, %s1102_s20  ;;  %s42_s17 = int_to_ptr.vmem [resolvable:$true] %s41_s17 }
  0x25   :  { %p1106_p3 = scmp.lt.u32.totalorder %s1102_s20, %s1393_s2 }
  0x27   :  { %p1108_p4 = pnand %p1106_p3, %p1103_p2 }
  0x29   :  { %1111 = shalt.err (!%p1108_p4)
}
  0x2a   :  { %s1112_s26 = scalar_lea.vmem %s42_s17, 128  ;;  %p1117_p6 = scmp.lt.s32.totalorder %s42_s17, %s42_s17 }
  0x2b   :  { %p1113_p5 = scmp.ne.s32.totalorder %s42_s17, %s1112_s26  ;;  %p1118_p7 = scmp.lt.s32.totalorder %s1112_s26, %s1112_s26 }
  0x2d   :  { %p1119_p8 = por %p1118_p7, %p1117_p6 }
  0x2f   :  { %p1120_p9 = pnand %p1119_p8, %p1113_p5 }
  0x31   :  { %1123 = shalt.err (!%p1120_p9)
}
  0x32   :  { %44 = dma.hbm_to_vmem [thread:$0]  %s1393_s2, 128, %s42_s17, [#allocation6]  }
  0x33   :  { %1144 = dma.done.wait [#allocation3], 128  }
  0x34   :  { %1145 = vsyncadd [#allocation3], 4294967168 }
  0x35   :  { %1146 = dma.done.wait [#allocation6], 256  }
  0x36   :  { %1147 = vsyncadd [#allocation6], 4294967040  ;;  %v1155_v0 = vmov 0.0   ;;  %vm1156_vm0 = vmmov 0   ;;  %vm60_vm1 = vcmask 261120   ;;  %v1227_v1 = vld [vmem:[#allocation7] sm:$0xff]  ;;  %v283_v34 = vlaneseq }
  0x37   :  { %959 = vmatprep.subr.mxu0 %v1155_v0  ;;  %961 = vmatprep.mubr.msk.f32.mxu0 %vm1156_vm0, %v1155_v0  ;;  %v56_v2 = vld [vmem:[#allocation2] sm:$0xff]  ;;  %v57_v3 = vld [vmem:[#allocation5] sm:$0xff]  ;;  %vm289_vm2 = vcmask 64512   ;;  %vm375_vm12 = vcmask 57344   ;;  %vm364_vm13 = vcmask 7168   ;;  %s1124_s16 = scalar_lea.hbm %s1395_s4, 16 }
  0x38   :  { %964 = vmatprep.subr.mxu1 %v1155_v0  ;;  %966 = vmatprep.mubr.msk.f32.mxu1 %vm1156_vm0, %v1155_v0  ;;  %v58_v4 = vmul.f32 2.0, %v56_v2  ;;  %v59_v5 = vmul.f32 2.0, %v57_v3  ;;  %v1239_v6 = vld [vmem:[%s1394_s3] sm:$0xff]  ;;  %v284_v35 = vshrl.u32 %v283_v34, 7  ;;  %v286_v36 = vand.u32 127, %v283_v34  ;;  %p1125_p10 = scmp.ne.s32.totalorder %s1395_s4, %s1124_s16  ;;  %p1128_p11 = scmp.lt.u32.totalorder %s1124_s16, %s1395_s4 }
  0x39   :  { %394 = vxpose.xlu0.b32.start.end [1/1] (short) (narrow) %v1227_v1, 8  ;;  %960 = vmatpush3.xpose.msk.msra.mxu0 %vm60_vm1, %v56_v2 }
  0x3a   :  { %969 = vmatprep.subr.mxu0 %v1155_v0  ;;  %965 = vmatpush3.xpose.msk.msra.mxu1 %vm60_vm1, %v57_v3  ;;  %vm1260_vm3 = vcmp.eq.s32.totalorder %v284_v35, %v286_v36  ;;  %p1130_p12 = pnand %p1128_p11, %p1125_p10 }
  0x3b   :  { %974 = vmatprep.subr.mxu1 %v1155_v0 }
  0x3c   :  { %962 = vmatmul.mubr.msk.f32.vlgmr.msra.gmra.mrb[0].mxu0 %vm60_vm1, %v58_v4 }
  0x3d   :  { %970 = vmatpush3.xpose.msk.msra.mxu0 %vm60_vm1, %v57_v3  ;;  %971 = vmatprep.mubr.msk.f32.mxu0 %vm1156_vm0, %v1155_v0 }
  0x3e   :  { %967 = vmatmul.mubr.msk.f32.vlgmr.msra.gmra.mrb[0].mxu1 %vm60_vm1, %v58_v4  ;;  %979 = vmatprep.subr.mxu0 %v1155_v0 }
  0x3f   :  { %975 = vmatpush3.msra.mxu1 %v1227_v1  ;;  %976 = vmatprep.mubr.msk.f32.mxu1 %vm1156_vm0, %v1155_v0 }
  0x40   :  { %972 = vmatmul.mubr.msk.f32.vlgmr.msra.gmra.mrb[2].mxu0 %vm60_vm1, %v59_v5  ;;  %569 = vxpose.xlu0.b32.start.end [1/1] (short) (narrow) %v1239_v6, 8  ;;  %v674_v5 = vmul.f32 %v1227_v1, %v1227_v1 }
  0x41   :  { %980 = vmatpush3.msra.mxu0 %v1239_v6  ;;  %981 = vmatprep.mubr.msk.f32.mxu0 %vm1156_vm0, %v1155_v0 }
  0x42   :  { %984 = vmatprep.subr.mxu1 %v1155_v0 }
  0xb9   :  { %v410_v7 = vpop.trf.xlu0 }
  0xba   :  { %977 = vmatmul.mubr.msk.f32.vlgmr.msra.gmra.mrb[2].mxu1 %vm289_vm2, %v410_v7  ;;  %982 = vmatmul.mubr.msk.f32.vlgmr.msra.gmra.mrb[4].mxu0 %vm289_vm2, %v410_v7  ;;  %v689_v7 = vmul.f32 %v1239_v6, %v1239_v6 }
  0xbb   :  { %985 = vmatpush3.msra.mxu1 %v1239_v6  ;;  %986 = vmatprep.mubr.msk.f32.mxu1 %vm1156_vm0, %v1155_v0 }
  0xc0   :  { %v585_v8 = vpop.trf.xlu0 }
  0xc1   :  { %987 = vmatmul.mubr.msk.f32.vlgmr.msra.gmra.mrb[4].mxu1 %vm289_vm2, %v585_v8  ;;  %v675_v8 = vsel %vm289_vm2, %v674_v5, 0.0 }
 0x10f   :  { %v1252_v9 = vpop.f32.mrb[0].mxu0 }
 0x110   :  { %v963_v10 = vpop.f32.mrb[1].mxu0  ;;  %v299_v2 = vsel %vm289_vm2, %v1252_v9, -inf }
 0x111   :  { %v1254_v11 = vpop.f32.mrb[0].mxu1  ;;  %v690_v10 = vsel %vm289_vm2, %v689_v7, 0.0 }
 0x112   :  { %v302_v12 = vsel %vm289_vm2, %v1254_v11, -inf  ;;  %v968_v13 = vpop.f32.mrb[1].mxu1 }
 0x113   :  { %v324_v14 = vrot.slane %v302_v12, 4  ;;  %v279_v15 = vpop.f32.mrb[2].mxu0  ;;  %303 = vmax.xlane.f32.xlu0 %v302_v12  ;;  %v691_v13 = vrot.slane %v690_v10, 4 }
 0x114   :  { %v330_v16 = vsel %vm289_vm2, %v279_v15, -inf  ;;  %v973_v17 = vpop.f32.mrb[3].mxu0 }
 0x115   :  { %v325_v18 = vmax.f32 %v302_v12, %v324_v14  ;;  %v331_v19 = vrot.slane %v330_v16, 4  ;;  %v676_v12 = vrot.slane %v675_v8, 4 }
 0x117   :  { %v326_v20 = vrot.slane %v325_v18, 2  ;;  %v332_v21 = vmax.f32 %v330_v16, %v331_v19  ;;  %v677_v14 = vadd.f32 %v676_v12, %v675_v8 }
 0x119   :  { %v327_v22 = vmax.f32 %v325_v18, %v326_v20  ;;  %v333_v23 = vrot.slane %v332_v21, 2  ;;  %v678_v16 = vrot.slane %v677_v14, 2 }
 0x11b   :  { %v328_v24 = vrot.slane %v327_v22, 1  ;;  %v334_v25 = vmax.f32 %v332_v21, %v333_v23  ;;  %v679_v18 = vadd.f32 %v678_v16, %v677_v14 }
 0x11d   :  { %v329_v26 = vmax.f32 %v327_v22, %v328_v24  ;;  %v335_v27 = vrot.slane %v334_v25, 1  ;;  %v680_v20 = vrot.slane %v679_v18, 1 }
 0x11f   :  { %v336_v28 = vmax.f32 %v334_v25, %v335_v27  ;;  %v681_v22 = vadd.f32 %v680_v20, %v679_v18 }
 0x121   :  { %v337_v29 = vmax.f32 %v329_v26, %v336_v28  ;;  %vm684_vm4 = vcmp.eq.f32.partialorder %v681_v22, inf  ;;  %vm686_vm6 = vcmp.eq.f32.partialorder %v681_v22, 0.0 }
 0x123   :  { %v338_v30 = vsub.f32 %v1254_v11, %v337_v29  ;;  %v348_v31 = vsub.f32 %v279_v15, %v337_v29  ;;  %v692_v15 = vadd.f32 %v691_v13, %v690_v10 }
 0x125   :  { %v339_v32 = vmul.f32 1.442695, %v338_v30  ;;  %v349_v33 = vmul.f32 1.442695, %v348_v31  ;;  %v693_v17 = vrot.slane %v692_v15, 2  ;;  %v687_v30 = vand.u32 2147483648, %v681_v22 }
 0x127   :  { %1012 = vpow2.f32 %v339_v32  ;;  %v694_v19 = vadd.f32 %v693_v17, %v692_v15 }
 0x128   :  { %1014 = vpow2.f32 %v349_v33 }
 0x129   :  { %v695_v21 = vrot.slane %v694_v19, 1 }
 0x12b   :  { %v696_v23 = vadd.f32 %v695_v21, %v694_v19 }
 0x12d   :  { %vm699_vm5 = vcmp.eq.f32.partialorder %v696_v23, inf  ;;  %v702_v31 = vand.u32 2147483648, %v696_v23  ;;  %vm701_vm7 = vcmp.eq.f32.partialorder %v696_v23, 0.0 }
 0x131   :  { %v1013_v38 = vpop.eup %1012 }
 0x132   :  { %v1015_v39 = vpop.eup %1014  ;;  %v341_v40 = vsel %vm289_vm2, %v1013_v38, 0.0 }
 0x133   :  { %v351_v41 = vsel %vm1260_vm3, 0.0, %v1015_v39  ;;  %v342_v42 = vrot.slane %v341_v40, 4 }
 0x134   :  { %v352_v43 = vsel %vm289_vm2, %v351_v41, 0.0 }
 0x135   :  { %v353_v44 = vrot.slane %v352_v43, 4  ;;  %v343_v45 = vadd.f32 %v342_v42, %v341_v40 }
 0x137   :  { %v344_v46 = vrot.slane %v343_v45, 2  ;;  %v354_v47 = vadd.f32 %v353_v44, %v352_v43 }
 0x139   :  { %v345_v48 = vadd.f32 %v344_v46, %v343_v45  ;;  %v355_v49 = vrot.slane %v354_v47, 2 }
 0x13b   :  { %v346_v50 = vrot.slane %v345_v48, 1  ;;  %v356_v51 = vadd.f32 %v355_v49, %v354_v47 }
 0x13d   :  { %v347_v52 = vadd.f32 %v346_v50, %v345_v48  ;;  %v357_v53 = vrot.slane %v356_v51, 1 }
 0x13f   :  { %v358_v54 = vadd.f32 %v357_v53, %v356_v51 }
 0x141   :  { %v359_v55 = vadd.f32 %v358_v54, %v347_v52 }
 0x143   :  { %1016 = vlog2.f32 %v359_v55 }
 0x144   :  { %1018 = vrsqrt.f32 %v681_v22 }
 0x145   :  { %1020 = vrsqrt.f32 %v696_v23 }
 0x14d   :  { %v1017_v56 = vpop.eup %1016 }
 0x14e   :  { %v361_v57 = vmul.f32 0.6931472, %v1017_v56  ;;  %v1019_v26 = vpop.eup %1018 }
 0x14f   :  { %v1021_v27 = vpop.eup %1020  ;;  %v683_v28 = vmul.f32 %v1019_v26, %v681_v22 }
 0x150   :  { %v1268_v58 = vadd.f32 %v361_v57, %v337_v29  ;;  %v698_v29 = vmul.f32 %v1021_v27, %v696_v23  ;;  %v288_v27 = vsel %vm1260_vm3, %v1254_v11, 0.0 }
 0x151   :  { %v685_v32 = vsel %vm684_vm4, %v681_v22, %v683_v28 }
 0x152   :  { %v700_v33 = vsel %vm699_vm5, %v696_v23, %v698_v29  ;;  %v688_v38 = vsel %vm686_vm6, %v687_v30, %v685_v32  ;;  %v1322_v29 = vsel %vm289_vm2, %v288_v27, 0.0 }
 0x153   :  { %v703_v39 = vsel %vm701_vm7, %v702_v31, %v700_v33 }
 0x18d   :  { %v1270_v59 = vpop.f32.mrb[2].mxu1  ;;  %v1272_v60 = vpop.f32.mrb[4].mxu0 }
 0x18e   :  { %v978_v61 = vpop.f32.mrb[3].mxu1  ;;  %v983_v62 = vpop.f32.mrb[5].mxu0  ;;  %v704_v63 = vsel %vm1260_vm3, %v1270_v59, 0.0 }
 0x18f   :  { %v705_v0 = vsel %vm289_vm2, %v704_v63, 0.0 }
 0x190   :  { %706 = vadd.xlane.f32.xlu1 %v705_v0 }
 0x194   :  { %300 = vmax.xlane.f32.xlu1 %v299_v2  ;;  %v1280_v3 = vpop.f32.mrb[4].mxu1 }
 0x195   :  { %v988_v4 = vpop.f32.mrb[5].mxu1 }
 0x1a0   :  { %v304_v43 = vpop.xlane.xlu0 %303 }
 0x21d   :  { %v707_v24 = vpop.xlane.xlu1 %706 }
 0x21e   :  { %v708_v25 = vmax.f32 %v707_v24, 0.0 }
 0x220   :  { %1022 = vrsqrt.f32 %v708_v25  ;;  %vm711_vm8 = vcmp.eq.f32.partialorder %v708_v25, inf  ;;  %v714_v36 = vand.u32 2147483648, %v708_v25  ;;  %vm713_vm9 = vcmp.eq.f32.partialorder %v708_v25, 0.0 }
 0x221   :  { %v301_v40 = vpop.xlane.xlu1 %300 }
 0x222   :  { %v1288_v46 = vmax.f32 %v301_v40, %v304_v43 }
 0x224   :  { %v306_v49 = vsub.f32 %v1252_v9, %v1288_v46  ;;  %v313_v51 = vsub.f32 %v1254_v11, %v1288_v46  ;;  %v716_v9 = vsel %vm1260_vm3, %v1280_v3, 0.0 }
 0x225   :  { %v717_v63 = vsel %vm289_vm2, %v716_v9, 0.0 }
 0x226   :  { %v307_v50 = vmul.f32 1.442695, %v306_v49  ;;  %v314_v55 = vmul.f32 1.442695, %v313_v51 }
 0x22a   :  { %v1023_v34 = vpop.eup %1022 }
 0x22b   :  { %v710_v35 = vmul.f32 %v1023_v34, %v708_v25 }
 0x22d   :  { %v712_v41 = vsel %vm711_vm8, %v708_v25, %v710_v35 }
 0x22e   :  { %v715_v42 = vsel %vm713_vm9, %v714_v36, %v712_v41 }
 0x22f   :  { %v728_v44 = vmul.f32 %v715_v42, %v688_v38  ;;  %v732_v45 = vmul.f32 %v715_v42, %v703_v39 }
 0x231   :  { %v729_v47 = vmax.f32 %v728_v44, 1e-08  ;;  %v733_v48 = vmax.f32 %v732_v45, 1e-08 }
 0x233   :  { %1024 = vrcp.f32 %v729_v47 }
 0x234   :  { %1026 = vrcp.f32 %v733_v48 }
 0x235   :  { %1028 = vpow2.f32 %v307_v50 }
 0x236   :  { %1030 = vpow2.f32 %v314_v55 }
 0x23d   :  { %v1025_v52 = vpop.eup %1024 }
 0x23e   :  { %v1027_v53 = vpop.eup %1026  ;;  %v731_v54 = vmul.f32 %v1025_v52, %v1270_v59 }
 0x23f   :  { %v1297_v57 = vmul.f32 %v1027_v53, %v1272_v60  ;;  %v1029_v62 = vpop.eup %1028 }
 0x240   :  { %v750_v56 = vsel %vm289_vm2, %v731_v54, -inf  ;;  %v309_v59 = vsel %vm1260_vm3, 0.0, %v1029_v62  ;;  %v1031_v0 = vpop.eup %1030 }
 0x241   :  { %751 = vmax.xlane.f32.xlu1 %v750_v56  ;;  %v753_v61 = vsel %vm289_vm2, %v1297_v57, -inf  ;;  %v310_v60 = vsel %vm289_vm2, %v309_v59, 0.0  ;;  %v316_v2 = vsel %vm289_vm2, %v1031_v0, 0.0  ;;  %v740_v30 = vsel %vm1260_vm3, %v1297_v57, 0.0 }
 0x242   :  { %v741_v31 = vsel %vm289_vm2, %v740_v30, 0.0  ;;  %v774_v32 = vrot.slane %v753_v61, 4  ;;  %v839_v30 = vsel %vm289_vm2, %v1227_v1, 0.0 }
 0x244   :  { %v775_v33 = vmax.f32 %v753_v61, %v774_v32 }
 0x245   :  { %754 = vmax.xlane.f32.xlu1 %v753_v61 }
 0x246   :  { %v776_v11 = vrot.slane %v775_v33, 2 }
 0x249   :  { %718 = vadd.xlane.f32.xlu1 %v717_v63 }
 0x24d   :  { %311 = vadd.xlane.f32.xlu1 %v310_v60 }
 0x251   :  { %317 = vadd.xlane.f32.xlu1 %v316_v2 }
 0x2ce   :  { %v752_v4 = vpop.xlane.xlu1 %751 }
 0x2d2   :  { %v755_v5 = vpop.xlane.xlu1 %754 }
 0x2d3   :  { %v1309_v7 = vmax.f32 %v752_v4, %v755_v5  ;;  %v744_v4 = vrot.slane %v741_v31, 4 }
 0x2d5   :  { %v757_v8 = vsub.f32 %v731_v54, %v1309_v7  ;;  %v764_v10 = vsub.f32 %v1297_v57, %v1309_v7 }
 0x2d6   :  { %v719_v12 = vpop.xlane.xlu1 %718 }
 0x2d7   :  { %v758_v13 = vmul.f32 1.442695, %v757_v8  ;;  %v720_v14 = vmax.f32 %v719_v12, 0.0  ;;  %v765_v15 = vmul.f32 1.442695, %v764_v10  ;;  %v745_v12 = vadd.f32 %v744_v4, %v741_v31 }
 0x2d9   :  { %1032 = vpow2.f32 %v758_v13  ;;  %vm723_vm10 = vcmp.eq.f32.partialorder %v720_v14, inf  ;;  %v726_v19 = vand.u32 2147483648, %v720_v14  ;;  %vm725_vm11 = vcmp.eq.f32.partialorder %v720_v14, 0.0 }
 0x2da   :  { %1034 = vrsqrt.f32 %v720_v14 }
 0x2db   :  { %1036 = vpow2.f32 %v765_v15 }
 0x2e3   :  { %v1033_v16 = vpop.eup %1032 }
 0x2e4   :  { %v760_v17 = vsel %vm1260_vm3, 0.0, %v1033_v16  ;;  %v1035_v18 = vpop.eup %1034 }
 0x2e5   :  { %v761_v20 = vsel %vm289_vm2, %v760_v17, 0.0  ;;  %v1037_v21 = vpop.eup %1036  ;;  %v722_v22 = vmul.f32 %v1035_v18, %v720_v14 }
 0x2e6   :  { %762 = vadd.xlane.f32.xlu1 %v761_v20  ;;  %v767_v25 = vsel %vm289_vm2, %v1037_v21, 0.0 }
 0x2e7   :  { %v724_v23 = vsel %vm723_vm10, %v720_v14, %v722_v22  ;;  %v746_v14 = vrot.slane %v745_v12, 2  ;;  %v312_v22 = vpop.xlane.xlu1 %311 }
 0x2e8   :  { %v727_v24 = vsel %vm725_vm11, %v726_v19, %v724_v23 }
 0x2e9   :  { %v736_v26 = vmul.f32 %v727_v24, %v703_v39  ;;  %v777_v39 = vmax.f32 %v775_v33, %v776_v11  ;;  %v747_v37 = vadd.f32 %v746_v14, %v745_v12  ;;  %v840_v33 = vrot.slane %v839_v30, 4 }
 0x2ea   :  { %768 = vadd.xlane.f32.xlu1 %v767_v25  ;;  %v293_v25 = vrot.slane %v1322_v29, 4 }
 0x2eb   :  { %v737_v28 = vmax.f32 %v736_v26, 1e-08  ;;  %v778_v42 = vrot.slane %v777_v39, 1  ;;  %v748_v15 = vrot.slane %v747_v37, 1  ;;  %v318_v23 = vpop.xlane.xlu1 %317 }
 0x2ec   :  { %v319_v24 = vadd.f32 %v318_v23, %v312_v22  ;;  %v294_v26 = vadd.f32 %v293_v25, %v1322_v29 }
 0x2ed   :  { %1038 = vrcp.f32 %v737_v28  ;;  %v779_v45 = vmax.f32 %v777_v39, %v778_v42  ;;  %v749_v18 = vadd.f32 %v748_v15, %v747_v37 }
 0x2ee   :  { %291 = vadd.xlane.f32.xlu1 %v1322_v29  ;;  %v295_v27 = vrot.slane %v294_v26, 2 }
 0x2f0   :  { %v296_v28 = vadd.f32 %v295_v27, %v294_v26 }
 0x2f2   :  { %742 = vadd.xlane.f32.xlu1 %v741_v31 }
 0x2f7   :  { %v1039_v34 = vpop.eup %1038 }
 0x2f8   :  { %v739_v35 = vmul.f32 %v1039_v34, %v1280_v3 }
 0x2fa   :  { %v780_v36 = vsel %vm289_vm2, %v739_v35, -inf }
 0x2fb   :  { %v781_v38 = vrot.slane %v780_v36, 4 }
 0x2fd   :  { %v782_v40 = vmax.f32 %v780_v36, %v781_v38  ;;  %v841_v38 = vadd.f32 %v840_v33, %v839_v30 }
 0x2ff   :  { %v783_v41 = vrot.slane %v782_v40, 2  ;;  %v842_v42 = vrot.slane %v841_v38, 2 }
 0x301   :  { %v784_v43 = vmax.f32 %v782_v40, %v783_v41 }
 0x303   :  { %v785_v44 = vrot.slane %v784_v43, 1 }
 0x305   :  { %v786_v47 = vmax.f32 %v784_v43, %v785_v44  ;;  %v843_v44 = vadd.f32 %v842_v42, %v841_v38 }
 0x307   :  { %v787_v48 = vmax.f32 %v779_v45, %v786_v47 }
 0x309   :  { %v788_v49 = vsub.f32 %v1297_v57, %v787_v48  ;;  %v798_v50 = vsub.f32 %v739_v35, %v787_v48  ;;  %v297_v35 = vrot.slane %v296_v28, 1 }
 0x30b   :  { %v789_v51 = vmul.f32 1.442695, %v788_v49  ;;  %v799_v52 = vmul.f32 1.442695, %v798_v50  ;;  %v298_v40 = vadd.f32 %v297_v35, %v296_v28  ;;  %v844_v49 = vrot.slane %v843_v44, 1 }
 0x30d   :  { %1040 = vpow2.f32 %v789_v51  ;;  %v363_v1 = vsub.f32 %v1268_v58, %v298_v40 }
 0x30e   :  { %1042 = vpow2.f32 %v799_v52  ;;  %v1346_v52 = vadd.f32 %v844_v49, %v843_v44 }
 0x30f   :  { %v376_v45 = vsel %vm375_vm12, %v363_v1, 0.0 }
 0x310   :  { %v846_v58 = vsel %vm375_vm12, %v1346_v52, 0.0 }
 0x317   :  { %v1041_v3 = vpop.eup %1040 }
 0x318   :  { %v1043_v53 = vpop.eup %1042  ;;  %v791_v54 = vsel %vm289_vm2, %v1041_v3, 0.0 }
 0x319   :  { %v792_v55 = vrot.slane %v791_v54, 4  ;;  %v801_v56 = vsel %vm1260_vm3, 0.0, %v1043_v53  ;;  %v873_v53 = vsel %vm289_vm2, %v1239_v6, 0.0 }
 0x31a   :  { %v802_v9 = vsel %vm289_vm2, %v801_v56, 0.0 }
 0x31b   :  { %v793_v61 = vadd.f32 %v792_v55, %v791_v54  ;;  %v803_v62 = vrot.slane %v802_v9, 4  ;;  %v874_v54 = vrot.slane %v873_v53, 4 }
 0x31d   :  { %v794_v63 = vrot.slane %v793_v61, 2  ;;  %v804_v59 = vadd.f32 %v803_v62, %v802_v9  ;;  %v875_v55 = vadd.f32 %v874_v54, %v873_v53 }
 0x31f   :  { %v795_v57 = vadd.f32 %v794_v63, %v793_v61  ;;  %v805_v60 = vrot.slane %v804_v59, 2  ;;  %v876_v56 = vrot.slane %v875_v55, 2 }
 0x321   :  { %v796_v0 = vrot.slane %v795_v57, 1  ;;  %v806_v2 = vadd.f32 %v805_v60, %v804_v59  ;;  %v877_v9 = vadd.f32 %v876_v56, %v875_v55 }
 0x323   :  { %v797_v5 = vadd.f32 %v796_v0, %v795_v57  ;;  %v807_v8 = vrot.slane %v806_v2, 1  ;;  %v878_v61 = vrot.slane %v877_v9, 1 }
 0x325   :  { %v808_v10 = vadd.f32 %v807_v8, %v806_v2 }
 0x327   :  { %v809_v13 = vadd.f32 %v808_v10, %v797_v5 }
 0x329   :  { %1044 = vlog2.f32 %v809_v13 }
 0x32a   :  { %1046 = vlog2.f32 %v319_v24 }
 0x333   :  { %v1045_v16 = vpop.eup %1044 }
 0x334   :  { %v811_v17 = vmul.f32 0.6931472, %v1045_v16  ;;  %v1047_v31 = vpop.eup %1046 }
 0x335   :  { %v321_v34 = vmul.f32 0.6931472, %v1047_v31 }
 0x336   :  { %v812_v19 = vadd.f32 %v811_v17, %v787_v48 }
 0x337   :  { %v322_v39 = vadd.f32 %v321_v34, %v1288_v46 }
 0x338   :  { %v824_v20 = vsub.f32 %v812_v19, %v749_v18 }
 0x33a   :  { %v825_v21 = vsel %vm375_vm12, %v824_v20, 0.0 }
 0x33b   :  { %826 = vadd.xlane.f32.xlu0 %v825_v21 }
 0x373   :  { %v763_v32 = vpop.xlane.xlu1 %762 }
 0x377   :  { %v769_v11 = vpop.xlane.xlu1 %768 }
 0x378   :  { %v770_v36 = vadd.f32 %v769_v11, %v763_v32 }
 0x37a   :  { %1048 = vlog2.f32 %v770_v36 }
 0x37b   :  { %v292_v41 = vpop.xlane.xlu1 %291 }
 0x37c   :  { %v323_v29 = vsub.f32 %v322_v39, %v292_v41 }
 0x37e   :  { %v365_v43 = vsel %vm364_vm13, %v323_v29, 0.0 }
 0x37f   :  { %366 = vadd.xlane.f32.xlu1 %v365_v43  ;;  %v743_v46 = vpop.xlane.xlu1 %742 }
 0x383   :  { %377 = vadd.xlane.f32.xlu1 %v376_v45 }
 0x384   :  { %v1049_v47 = vpop.eup %1048 }
 0x385   :  { %v772_v48 = vmul.f32 0.6931472, %v1049_v47 }
 0x387   :  { %v773_v50 = vadd.f32 %v772_v48, %v1309_v7  ;;  %v1353_v7 = vadd.f32 %v878_v61, %v877_v9 }
 0x389   :  { %v813_v51 = vsub.f32 %v773_v50, %v743_v46  ;;  %v880_v62 = vsel %vm375_vm12, %v1353_v7, 0.0 }
 0x38b   :  { %v814_v3 = vsel %vm364_vm13, %v813_v51, 0.0 }
 0x38c   :  { %815 = vadd.xlane.f32.xlu1 %v814_v3 }
 0x390   :  { %847 = vadd.xlane.f32.xlu1 %v846_v58 }
 0x394   :  { %881 = vadd.xlane.f32.xlu1 %v880_v62 }
 0x3c8   :  { %v827_v57 = vpop.xlane.xlu0 %826 }
 0x3c9   :  { %v828_v2 = vrot.slane %v827_v57, 4 }
 0x3cb   :  { %v829_v10 = vadd.f32 %v828_v2, %v827_v57 }
 0x3cd   :  { %v830_v15 = vrot.slane %v829_v10, 2 }
 0x3cf   :  { %v831_v22 = vadd.f32 %v830_v15, %v829_v10 }
 0x3d1   :  { %v832_v27 = vrot.slane %v831_v22, 1 }
 0x3d3   :  { %v833_v33 = vadd.f32 %v832_v27, %v831_v22 }
 0x40c   :  { %v367_v63 = vpop.xlane.xlu1 %366 }
 0x40d   :  { %v368_v59 = vrot.slane %v367_v63, 4 }
 0x40f   :  { %v369_v60 = vadd.f32 %v368_v59, %v367_v63 }
 0x410   :  { %v378_v0 = vpop.xlane.xlu1 %377 }
 0x411   :  { %v370_v4 = vrot.slane %v369_v60, 2  ;;  %v379_v5 = vrot.slane %v378_v0, 4 }
 0x413   :  { %v380_v6 = vadd.f32 %v379_v5, %v378_v0  ;;  %v371_v8 = vadd.f32 %v370_v4, %v369_v60 }
 0x415   :  { %v381_v12 = vrot.slane %v380_v6, 2  ;;  %v372_v13 = vrot.slane %v371_v8, 1 }
 0x417   :  { %v373_v14 = vadd.f32 %v372_v13, %v371_v8  ;;  %v382_v37 = vadd.f32 %v381_v12, %v380_v6 }
 0x419   :  { %989 = vpush %v373_v14  ;;  %v816_v16 = vpop.xlane.xlu1 %815  ;;  %v383_v17 = vrot.slane %v382_v37, 1 }
 0x41a   :  { %v817_v18 = vrot.slane %v816_v16, 4 }
 0x41b   :  { %v384_v19 = vadd.f32 %v383_v17, %v382_v37 }
 0x41c   :  { %v818_v20 = vadd.f32 %v817_v18, %v816_v16 }
 0x41d   :  { %991 = vpush %v384_v19  ;;  %v848_v21 = vpop.xlane.xlu1 %847 }
 0x41e   :  { %v819_v23 = vrot.slane %v818_v20, 2  ;;  %v849_v24 = vrot.slane %v848_v21, 4 }
 0x420   :  { %v850_v25 = vadd.f32 %v849_v24, %v848_v21  ;;  %v820_v26 = vadd.f32 %v819_v23, %v818_v20 }
 0x421   :  { %v882_v42 = vpop.xlane.xlu1 %881 }
 0x422   :  { %v851_v28 = vrot.slane %v850_v25, 2  ;;  %v821_v30 = vrot.slane %v820_v26, 1  ;;  %v883_v43 = vrot.slane %v882_v42, 4 }
 0x424   :  { %v822_v31 = vadd.f32 %v821_v30, %v820_v26  ;;  %v852_v32 = vadd.f32 %v851_v28, %v850_v25  ;;  %v884_v1 = vadd.f32 %v883_v43, %v882_v42 }
 0x426   :  { %993 = vpush %v822_v31  ;;  %v853_v34 = vrot.slane %v852_v32, 1  ;;  %v885_v44 = vrot.slane %v884_v1, 2 }
 0x427   :  { %995 = vpush %v833_v33 }
 0x428   :  { %v854_v35 = vadd.f32 %v853_v34, %v852_v32  ;;  %v886_v49 = vadd.f32 %v885_v44, %v884_v1 }
 0x42a   :  { %997 = vpush %v854_v35  ;;  %v887_v51 = vrot.slane %v886_v49, 1 }
 0x42c   :  { %v888_v58 = vadd.f32 %v887_v51, %v886_v49 }
 0x44a   :  { %s990_s3 = spop %989 }
 0x44e   :  { %s992_s28 = spop %991 }
 0x44f   :  { %s386_s29 = sadd.f32 %s992_s28, %s990_s3 }
 0x451   :  { %s389_s30 = smul.f32 0.0625, %s386_s29 }
 0x453   :  { %391 = sst [smem:[#allocation8]] %s389_s30 }
 0x457   :  { %s1357_s6 = spop %993 }
 0x458   :  { %s1359_s7 = spop %995 }
 0x459   :  { %s835_s8 = sadd.f32 %s1359_s7, %s1357_s6 }
 0x45b   :  { %s998_s9 = spop %997  ;;  %s838_s10 = smul.f32 0.0625, %s835_s8 }
 0x45c   :  { %v856_v11 = vstv %s998_s9 }
 0x45d   :  { %1050 = vrcp.f32 %v856_v11 }
 0x467   :  { %v1051_v36 = vpop.eup %1050 }
 0x468   :  { %v858_v38 = vmul.f32 %v1051_v36, %v1346_v52 }
 0x46a   :  { %1052 = vlog2.f32 %v858_v38 }
 0x474   :  { %v1053_v39 = vpop.eup %1052 }
 0x475   :  { %v860_v40 = vmul.f32 0.6931472, %v1053_v39 }
 0x477   :  { %v861_v41 = vmul.f32 %v860_v40, %v858_v38 }
 0x479   :  { %v862_v29 = vsel %vm375_vm12, %v861_v41, 0.0 }
 0x47a   :  { %863 = vadd.xlane.f32.xlu0 %v862_v29 }
 0x507   :  { %v864_v45 = vpop.xlane.xlu0 %863 }
 0x508   :  { %v865_v47 = vrot.slane %v864_v45, 4 }
 0x50a   :  { %v866_v48 = vadd.f32 %v865_v47, %v864_v45 }
 0x50c   :  { %v867_v50 = vrot.slane %v866_v48, 2 }
 0x50e   :  { %v868_v46 = vadd.f32 %v867_v50, %v866_v48 }
 0x510   :  { %v869_v3 = vrot.slane %v868_v46, 1 }
 0x512   :  { %v870_v52 = vadd.f32 %v869_v3, %v868_v46 }
 0x514   :  { %999 = vpush %v870_v52 }
 0x515   :  { %1001 = vpush %v888_v58 }
 0x545   :  { %s1000_s11 = spop %999 }
 0x546   :  { %s872_s12 = sadd.f32 2.0794415, %s1000_s11  ;;  %s1002_s13 = spop %1001 }
 0x547   :  { %v890_v53 = vstv %s1002_s13 }
 0x548   :  { %s907_s14 = sadd.f32 %s872_s12, %s838_s10  ;;  %1054 = vrcp.f32 %v890_v53 }
 0x552   :  { %v1055_v54 = vpop.eup %1054 }
 0x553   :  { %v892_v55 = vmul.f32 %v1055_v54, %v1353_v7 }
 0x555   :  { %1056 = vlog2.f32 %v892_v55 }
 0x55f   :  { %v1057_v56 = vpop.eup %1056 }
 0x560   :  { %v894_v9 = vmul.f32 0.6931472, %v1057_v56 }
 0x562   :  { %v895_v61 = vmul.f32 %v894_v9, %v892_v55 }
 0x564   :  { %v896_v62 = vsel %vm375_vm12, %v895_v61, 0.0 }
 0x565   :  { %897 = vadd.xlane.f32.xlu0 %v896_v62 }
 0x566   :  { %1133 = shalt.err (!%p1130_p12)
}
 0x567   :  { %s1157_s22 = smov [#allocation8]   ;;  %s1134_s27 = scalar_lea.hbm %s1396_s5, 16 }
 0x568   :  { %918 = dma.smem_to_hbm %s1157_s22, 16, %s1395_s4, [#allocation4]  }
 0x569   :  { %p1135_p13 = scmp.ne.s32.totalorder %s1396_s5, %s1134_s27  ;;  %p1138_p0 = scmp.lt.u32.totalorder %s1134_s27, %s1396_s5 }
 0x56b   :  { %p1140_p1 = pnand %p1138_p0, %p1135_p13 }
 0x5f2   :  { %v898_v7 = vpop.xlane.xlu0 %897 }
 0x5f3   :  { %v899_v63 = vrot.slane %v898_v7, 4 }
 0x5f5   :  { %v900_v59 = vadd.f32 %v899_v63, %v898_v7 }
 0x5f7   :  { %v901_v57 = vrot.slane %v900_v59, 2 }
 0x5f9   :  { %v902_v60 = vadd.f32 %v901_v57, %v900_v59 }
 0x5fb   :  { %v903_v0 = vrot.slane %v902_v60, 1 }
 0x5fd   :  { %v904_v2 = vadd.f32 %v903_v0, %v902_v60 }
 0x5ff   :  { %1003 = vpush %v904_v2 }
 0x630   :  { %s1004_s25 = spop %1003 }
 0x631   :  { %s906_s26 = sadd.f32 2.0794415, %s1004_s25 }
 0x633   :  { %s908_s0 = sadd.f32 %s907_s14, %s906_s26 }
 0x635   :  { %910 = sst [smem:[#allocation9]] %s908_s0 }
 0x636   :  { %1143 = shalt.err (!%p1140_p1)
}
 0x637   :  { %s1158_s30 = smov [#allocation9]  }
 0x638   :  { %926 = dma.smem_to_hbm %s1158_s30, 16, %s1396_s5, [#allocation10]  }
 0x639   :  { %1148 = dma.done.wait [#allocation4], 16  }
 0x63a   :  { %1149 = vsyncadd [#allocation4], 4294967280 }
 0x63b   :  { %1150 = dma.done.wait [#allocation10], 16  }
 0x63c   :  { %1151 = vsyncadd [#allocation10], 4294967280 }
 0x63d   :  { %933 = sfence }
 0x63e   :  { %934 = vsyncpa [#allocation3], 1 }
 0x63f   :  { %935 = vsyncpa [#allocation6], 1 }
 0x640   :  { %936 = vsyncpa [#allocation4], 1 }
 0x641   :  { %937 = vsyncpa [#allocation10], 1 }

</bundles_post_ra>
